<compile_context>
chip_gen: v7x
topology: tpu7x:2x2x1
jax: 0.10.0
libtpu: 0.0.40
codegen_flags: <defaults>
</compile_context>

<pallas_src>
import functools

import jax
import jax.numpy as jnp
from jax.experimental import pallas as pl
from jax.experimental.pallas import tpu as pltpu

EPS = 1e-5


def se_conv_bn_kernel(x_ref, gate_ref, w_ref, gamma_ref, beta_ref, o_ref, *, cin):
    # x_ref:     (N, tk, HW)   channels-first activation tile (Cin tile)
    # gate_ref:  (N, 1, tk)    pre-sigmoid SE gate tile (lane-dense)
    # w_ref:     (Cout, tk)    1x1 conv weight tile
    # gamma/beta:(Cout, 1)     BN affine parameters
    # o_ref:     (N, Cout, HW) f32 output block, resident across the Cin grid
    k = pl.program_id(0)
    n_batch, tk, _ = x_ref.shape

    @pl.when(k == 0)
    def _init():
        o_ref[...] = jnp.zeros_like(o_ref)

    w = w_ref[...]                                       # (Cout, tk)
    need_mask = (cin % tk) != 0
    if need_mask:
        base = k * tk
        lane_valid = (base + jax.lax.broadcasted_iota(jnp.int32, (1, tk), 1)) < cin
        sub_valid = (base + jax.lax.broadcasted_iota(jnp.int32, (tk, 1), 0)) < cin

    for n in range(n_batch):                             # static unroll, N is tiny
        g = jax.nn.sigmoid(gate_ref[n])                  # (1, tk) lane-dense -> EUP
        w_n = w * g                                      # (Cout, tk) sublane bcast
        x_n = x_ref[n]                                   # (tk, HW)
        if need_mask:
            # Zero out tail channels of the partial last tile (avoid 0*NaN).
            w_n = jnp.where(lane_valid, w_n, 0.0)
            x_n = jnp.where(sub_valid, x_n, 0.0)
        # 1x1 conv partial product on the MXU, accumulated into the resident output.
        o_ref[n] += jnp.dot(w_n, x_n, preferred_element_type=jnp.float32)

    @pl.when(k == pl.num_programs(0) - 1)
    def _finalize():
        # BatchNorm2d (training mode): biased batch stats over (N, H, W) per Cout.
        y = o_ref[...]                                   # (N, Cout, HW) f32
        cnt = y.shape[0] * y.shape[2]
        mean = jnp.sum(y, axis=(0, 2), keepdims=True) / cnt
        centered = y - mean
        var = jnp.sum(centered * centered, axis=(0, 2), keepdims=True) / cnt
        inv = jax.lax.rsqrt(var + EPS)
        o_ref[...] = (centered * inv * gamma_ref[...] + beta_ref[...]).astype(o_ref.dtype)


def se_conv_bn(x434, x438, conv_w, gamma, beta, *, max_tile_bytes=8 * 1024 * 1024):
    """x434: (N, Cin, H, W), x438: (N, Cin, 1, 1), conv_w: (Cout, Cin, 1, 1)."""
    N, Cin, H, W = x434.shape
    Cout = conv_w.shape[0]
    HW = H * W

    # Channels-first: all reshapes below are free (no transposes, no extra HBM pass).
    x_cf = x434.reshape(N, Cin, HW)
    gate = x438.reshape(N, 1, Cin)           # lane-dense gate
    w_mat = conv_w.reshape(Cout, Cin)
    gamma_b = gamma.reshape(Cout, 1)
    beta_b = beta.reshape(Cout, 1)

    # Tile selection: single grid step (tk = Cin) when the double-buffered x tile
    # fits in a small VMEM budget; otherwise tile Cin in multiples of 128.
    itemsize = x_cf.dtype.itemsize
    if 2 * N * Cin * HW * itemsize <= max_tile_bytes or Cin <= 128:
        tk = Cin
    else:
        per_ch = N * HW * itemsize           # bytes of x per Cin channel
        tk = (max_tile_bytes // (2 * per_ch)) // 128 * 128
        tk = int(max(128, min(tk, Cin)))
    k_steps = pl.cdiv(Cin, tk)

    grid_spec = pltpu.PrefetchScalarGridSpec(
        num_scalar_prefetch=0,
        grid=(k_steps,),
        in_specs=[
            pl.BlockSpec((N, tk, HW), lambda k: (0, k, 0)),   # x      (Cin tile)
            pl.BlockSpec((N, 1, tk), lambda k: (0, 0, k)),    # gate   (Cin tile)
            pl.BlockSpec((Cout, tk), lambda k: (0, k)),       # weight (Cin tile)
            pl.BlockSpec((Cout, 1), lambda k: (0, 0)),        # gamma
            pl.BlockSpec((Cout, 1), lambda k: (0, 0)),        # beta
        ],
        out_specs=pl.BlockSpec((N, Cout, HW), lambda k: (0, 0, 0)),
    )

    out = pl.pallas_call(
        functools.partial(se_conv_bn_kernel, cin=Cin),
        out_shape=jax.ShapeDtypeStruct((N, Cout, HW), jnp.float32),
        grid_spec=grid_spec,
        compiler_params=pltpu.CompilerParams(
            dimension_semantics=("arbitrary",),      # Cin axis is a reduction
            vmem_limit_bytes=32 * 1024 * 1024,       # safe on v5e/v6e/v7x
        ),
    )(x_cf, gate, w_mat, gamma_b, beta_b)

    # Free reshape straight back to NCHW (no transpose needed).
    return out.reshape(N, Cout, H, W)


def reference(x434, x438, conv_w, gamma, beta):
    g = jax.nn.sigmoid(x438)
    xg = x434 * g
    y = jax.lax.conv_general_dilated(
        xg, conv_w, window_strides=(1, 1), padding="VALID",
        dimension_numbers=("NCHW", "OIHW", "NCHW"))
    mean = jnp.mean(y, axis=(0, 2, 3), keepdims=True)
    var = jnp.mean((y - mean) ** 2, axis=(0, 2, 3), keepdims=True)
    yn = (y - mean) * jax.lax.rsqrt(var + EPS)
    return yn * gamma.reshape(1, -1, 1, 1) + beta.reshape(1, -1, 1, 1)


def make_inputs(key, N, Cin, Cout, H, W):
    k1, k2, k3, k4, k5 = jax.random.split(key, 5)
    x434 = jax.random.normal(k1, (N, Cin, H, W), dtype=jnp.float32)
    x438 = jax.random.normal(k2, (N, Cin, 1, 1), dtype=jnp.float32)
    conv_w = jax.random.normal(k3, (Cout, Cin, 1, 1), dtype=jnp.float32) * 0.05
    gamma = jax.random.normal(k4, (Cout,), dtype=jnp.float32) * 0.1 + 1.0
    beta = jax.random.normal(k5, (Cout,), dtype=jnp.float32) * 0.1
    return x434, x438, conv_w, gamma, beta


if __name__ == "__main__":
    key = jax.random.PRNGKey(0)
    key_a, key_b = jax.random.split(key)

    # Small shapes consistent with the module (SE gate + 1x1 conv + BN).
    # Single grid step: the whole Cin contraction lives in one VMEM tile.
    N, Cin, Cout, H, W = 2, 256, 32, 16, 16
    args = make_inputs(key_a, N, Cin, Cout, H, W)
    out = se_conv_bn(*args)
    jax.block_until_ready(out)
    ref = reference(*args)
    assert out.shape == (N, Cout, H, W), out.shape
    max_err = float(jnp.max(jnp.abs(out - ref)))
    assert jnp.allclose(out, ref, atol=1e-3, rtol=1e-3), max_err

    # Tiled-reduction path with a non-multiple-of-128 Cin tail: force tiling with a
    # tiny VMEM budget so the in-kernel tail masking (no activation padding) is hit.
    args2 = make_inputs(key_b, 1, 320, 16, 8, 8)
    out2 = se_conv_bn(*args2, max_tile_bytes=64 * 1024)
    jax.block_until_ready(out2)
    ref2 = reference(*args2)
    max_err2 = float(jnp.max(jnp.abs(out2 - ref2)))
    assert jnp.allclose(out2, ref2, atol=1e-3, rtol=1e-3), max_err2

    print("KERNEL_OK")
</pallas_src>

<mosaic_0001>
module attributes {stable_mosaic.version = 11 : i64} {
  func.func @se_conv_bn_kernel(%arg0: i32, %arg1: memref<2x256x256xf32, #tpu.memory_space<vmem>>, %arg2: memref<2x1x256xf32, #tpu.memory_space<vmem>>, %arg3: memref<32x256xf32, #tpu.memory_space<vmem>>, %arg4: memref<32x1xf32, #tpu.memory_space<vmem>>, %arg5: memref<32x1xf32, #tpu.memory_space<vmem>>, %arg6: memref<2x32x256xf32, #tpu.memory_space<vmem>>) attributes {dimension_semantics = [#tpu.dimension_semantics<arbitrary>], iteration_bounds = array<i64: 1>, scalar_prefetch = 0 : i64, scratch_operands = 0 : i64, tpu.core_type = #tpu.core_type<tc>, window_params = [{transform_indices = @transform_0, window_bounds = array<i64: 2, 256, 256>}, {transform_indices = @transform_1, window_bounds = array<i64: 2, 1, 256>}, {transform_indices = @transform_2, window_bounds = array<i64: 32, 256>}, {pipeline_mode = #tpu.pipeline_mode<synchronous>, transform_indices = @transform_3, window_bounds = array<i64: 32, 1>}, {pipeline_mode = #tpu.pipeline_mode<synchronous>, transform_indices = @transform_4, window_bounds = array<i64: 32, 1>}, {pipeline_mode = #tpu.pipeline_mode<synchronous>, transform_indices = @transform_5, window_bounds = array<i64: 2, 32, 256>}]} {
    %c0_i32 = arith.constant 0 : i32
    %0 = arith.cmpi eq, %arg0, %c0_i32 : i32
    %1 = arith.extui %0 : i1 to i32
    %c0_i32_0 = arith.constant 0 : i32
    %2 = arith.cmpi ne, %1, %c0_i32_0 : i32
    scf.if %2 {
      %cst_30 = arith.constant 0.000000e+00 : f32
      %43 = vector.broadcast %cst_30 : f32 to vector<2x32x256xf32>
      %c0_31 = arith.constant 0 : index
      %c0_32 = arith.constant 0 : index
      %c0_33 = arith.constant 0 : index
      %44 = vector.load %arg6[%c0_31, %c0_32, %c0_33] : memref<2x32x256xf32, #tpu.memory_space<vmem>>, vector<2x32x256xf32>
      tpu.vector_store %arg6[%c0_31, %c0_32, %c0_33], %43 {strides = array<i32>} : memref<2x32x256xf32, #tpu.memory_space<vmem>>, vector<2x32x256xf32>,
    } else {
    }
    %c0 = arith.constant 0 : index
    %c0_1 = arith.constant 0 : index
    %3 = vector.load %arg3[%c0, %c0_1] : memref<32x256xf32, #tpu.memory_space<vmem>>, vector<32x256xf32>
    %c0_2 = arith.constant 0 : index
    %c0_3 = arith.constant 0 : index
    %c0_4 = arith.constant 0 : index
    %4 = vector.load %arg2[%c0_2, %c0_3, %c0_4] : memref<2x1x256xf32, #tpu.memory_space<vmem>>, vector<1x1x256xf32>
    %5 = vector.shape_cast %4 : vector<1x1x256xf32> to vector<1x256xf32>
    %6 = arith.negf %5 : vector<1x256xf32>
    %7 = math.exp %6 : vector<1x256xf32>
    %cst = arith.constant 1.000000e+00 : f32
    %8 = vector.broadcast %cst : f32 to vector<1x256xf32>
    %9 = arith.addf %8, %7 : vector<1x256xf32>
    %10 = arith.divf %8, %9 : vector<1x256xf32>
    %11 = vector.broadcast %10 : vector<1x256xf32> to vector<32x256xf32>
    %12 = arith.mulf %3, %11 : vector<32x256xf32>
    %c0_5 = arith.constant 0 : index
    %c0_6 = arith.constant 0 : index
    %c0_7 = arith.constant 0 : index
    %13 = vector.load %arg1[%c0_5, %c0_6, %c0_7] : memref<2x256x256xf32, #tpu.memory_space<vmem>>, vector<1x256x256xf32>
    %14 = vector.shape_cast %13 : vector<1x256x256xf32> to vector<256x256xf32>
    %c0_8 = arith.constant 0 : index
    %c0_9 = arith.constant 0 : index
    %c0_10 = arith.constant 0 : index
    %15 = vector.load %arg6[%c0_8, %c0_9, %c0_10] : memref<2x32x256xf32, #tpu.memory_space<vmem>>, vector<1x32x256xf32>
    %16 = vector.shape_cast %15 : vector<1x32x256xf32> to vector<32x256xf32>
    %cst_11 = arith.constant dense<0.000000e+00> : vector<32x256xf32>
    %17 = tpu.matmul %12, %14, %cst_11 {dimension_numbers = #tpu.dot_dimension_numbers<[1], [0], [0], [1], [0, 0, 1, 1], [], []>} : vector<32x256xf32>, vector<256x256xf32>, vector<32x256xf32> -> vector<32x256xf32>
    %18 = arith.addf %16, %17 : vector<32x256xf32>
    %c0_12 = arith.constant 0 : index
    %c0_13 = arith.constant 0 : index
    %c0_14 = arith.constant 0 : index
    %19 = vector.load %arg6[%c0_12, %c0_13, %c0_14] : memref<2x32x256xf32, #tpu.memory_space<vmem>>, vector<1x32x256xf32>
    %20 = vector.shape_cast %19 : vector<1x32x256xf32> to vector<32x256xf32>
    %21 = vector.shape_cast %18 : vector<32x256xf32> to vector<1x32x256xf32>
    tpu.vector_store %arg6[%c0_12, %c0_13, %c0_14], %21 {strides = array<i32>} : memref<2x32x256xf32, #tpu.memory_space<vmem>>, vector<1x32x256xf32>,
    %c1 = arith.constant 1 : index
    %c0_15 = arith.constant 0 : index
    %c0_16 = arith.constant 0 : index
    %22 = vector.load %arg2[%c1, %c0_15, %c0_16] : memref<2x1x256xf32, #tpu.memory_space<vmem>>, vector<1x1x256xf32>
    %23 = vector.shape_cast %22 : vector<1x1x256xf32> to vector<1x256xf32>
    %24 = arith.negf %23 : vector<1x256xf32>
    %25 = math.exp %24 : vector<1x256xf32>
    %cst_17 = arith.constant 1.000000e+00 : f32
    %26 = vector.broadcast %cst_17 : f32 to vector<1x256xf32>
    %27 = arith.addf %26, %25 : vector<1x256xf32>
    %28 = arith.divf %26, %27 : vector<1x256xf32>
    %29 = vector.broadcast %28 : vector<1x256xf32> to vector<32x256xf32>
    %30 = arith.mulf %3, %29 : vector<32x256xf32>
    %c1_18 = arith.constant 1 : index
    %c0_19 = arith.constant 0 : index
    %c0_20 = arith.constant 0 : index
    %31 = vector.load %arg1[%c1_18, %c0_19, %c0_20] : memref<2x256x256xf32, #tpu.memory_space<vmem>>, vector<1x256x256xf32>
    %32 = vector.shape_cast %31 : vector<1x256x256xf32> to vector<256x256xf32>
    %c1_21 = arith.constant 1 : index
    %c0_22 = arith.constant 0 : index
    %c0_23 = arith.constant 0 : index
    %33 = vector.load %arg6[%c1_21, %c0_22, %c0_23] : memref<2x32x256xf32, #tpu.memory_space<vmem>>, vector<1x32x256xf32>
    %34 = vector.shape_cast %33 : vector<1x32x256xf32> to vector<32x256xf32>
    %cst_24 = arith.constant dense<0.000000e+00> : vector<32x256xf32>
    %35 = tpu.matmul %30, %32, %cst_24 {dimension_numbers = #tpu.dot_dimension_numbers<[1], [0], [0], [1], [0, 0, 1, 1], [], []>} : vector<32x256xf32>, vector<256x256xf32>, vector<32x256xf32> -> vector<32x256xf32>
    %36 = arith.addf %34, %35 : vector<32x256xf32>
    %c1_25 = arith.constant 1 : index
    %c0_26 = arith.constant 0 : index
    %c0_27 = arith.constant 0 : index
    %37 = vector.load %arg6[%c1_25, %c0_26, %c0_27] : memref<2x32x256xf32, #tpu.memory_space<vmem>>, vector<1x32x256xf32>
    %38 = vector.shape_cast %37 : vector<1x32x256xf32> to vector<32x256xf32>
    %39 = vector.shape_cast %36 : vector<32x256xf32> to vector<1x32x256xf32>
    tpu.vector_store %arg6[%c1_25, %c0_26, %c0_27], %39 {strides = array<i32>} : memref<2x32x256xf32, #tpu.memory_space<vmem>>, vector<1x32x256xf32>,
    %c0_i32_28 = arith.constant 0 : i32
    %40 = arith.cmpi eq, %arg0, %c0_i32_28 : i32
    %41 = arith.extui %40 : i1 to i32
    %c0_i32_29 = arith.constant 0 : i32
    %42 = arith.cmpi ne, %41, %c0_i32_29 : i32
    scf.if %42 {
      %c0_30 = arith.constant 0 : index
      %c0_31 = arith.constant 0 : index
      %c0_32 = arith.constant 0 : index
      %43 = vector.load %arg6[%c0_30, %c0_31, %c0_32] : memref<2x32x256xf32, #tpu.memory_space<vmem>>, vector<2x32x256xf32>
      %cst_33 = arith.constant dense<0.000000e+00> : vector<32xf32>
      %44 = vector.multi_reduction <add>, %43, %cst_33 [0, 2] : vector<2x32x256xf32> to vector<32xf32>
      %45 = vector.shape_cast %44 : vector<32xf32> to vector<1x32x1xf32>
      %cst_34 = arith.constant 5.120000e+02 : f32
      %46 = vector.broadcast %cst_34 : f32 to vector<1x32x1xf32>
      %47 = arith.divf %45, %46 : vector<1x32x1xf32>
      %48 = vector.broadcast %47 : vector<1x32x1xf32> to vector<2x32x256xf32>
      %49 = arith.subf %43, %48 : vector<2x32x256xf32>
      %50 = arith.mulf %49, %49 : vector<2x32x256xf32>
      %cst_35 = arith.constant dense<0.000000e+00> : vector<32xf32>
      %51 = vector.multi_reduction <add>, %50, %cst_35 [0, 2] : vector<2x32x256xf32> to vector<32xf32>
      %52 = vector.shape_cast %51 : vector<32xf32> to vector<1x32x1xf32>
      %cst_36 = arith.constant 5.120000e+02 : f32
      %53 = vector.broadcast %cst_36 : f32 to vector<1x32x1xf32>
      %54 = arith.divf %52, %53 : vector<1x32x1xf32>
      %cst_37 = arith.constant 9.99999974E-6 : f32
      %55 = vector.broadcast %cst_37 : f32 to vector<1x32x1xf32>
      %56 = arith.addf %54, %55 : vector<1x32x1xf32>
      %57 = math.rsqrt %56 : vector<1x32x1xf32>
      %58 = vector.broadcast %57 : vector<1x32x1xf32> to vector<2x32x256xf32>
      %59 = arith.mulf %49, %58 : vector<2x32x256xf32>
      %c0_38 = arith.constant 0 : index
      %c0_39 = arith.constant 0 : index
      %60 = vector.load %arg4[%c0_38, %c0_39] : memref<32x1xf32, #tpu.memory_space<vmem>>, vector<32x1xf32>
      %61 = vector.shape_cast %60 : vector<32x1xf32> to vector<1x32x1xf32>
      %62 = vector.broadcast %61 : vector<1x32x1xf32> to vector<2x32x256xf32>
      %63 = arith.mulf %59, %62 : vector<2x32x256xf32>
      %c0_40 = arith.constant 0 : index
      %c0_41 = arith.constant 0 : index
      %64 = vector.load %arg5[%c0_40, %c0_41] : memref<32x1xf32, #tpu.memory_space<vmem>>, vector<32x1xf32>
      %65 = vector.shape_cast %64 : vector<32x1xf32> to vector<1x32x1xf32>
      %66 = vector.broadcast %65 : vector<1x32x1xf32> to vector<2x32x256xf32>
      %67 = arith.addf %63, %66 : vector<2x32x256xf32>
      %c0_42 = arith.constant 0 : index
      %c0_43 = arith.constant 0 : index
      %c0_44 = arith.constant 0 : index
      %68 = vector.load %arg6[%c0_42, %c0_43, %c0_44] : memref<2x32x256xf32, #tpu.memory_space<vmem>>, vector<2x32x256xf32>
      tpu.vector_store %arg6[%c0_42, %c0_43, %c0_44], %67 {strides = array<i32>} : memref<2x32x256xf32, #tpu.memory_space<vmem>>, vector<2x32x256xf32>,
    } else {
    }
    return
  }
  func.func @transform_0(%arg0: i32) -> (i32, i32, i32) {
    %c0_i32 = arith.constant 0 : i32
    %c0_i32_0 = arith.constant 0 : i32
    %c0_i32_1 = arith.constant 0 : i32
    return %c0_i32, %arg0, %c0_i32_0 : i32, i32, i32
  }
  func.func @transform_1(%arg0: i32) -> (i32, i32, i32) {
    %c0_i32 = arith.constant 0 : i32
    %c0_i32_0 = arith.constant 0 : i32
    %c0_i32_1 = arith.constant 0 : i32
    return %c0_i32, %c0_i32_0, %arg0 : i32, i32, i32
  }
  func.func @transform_2(%arg0: i32) -> (i32, i32) {
    %c0_i32 = arith.constant 0 : i32
    %c0_i32_0 = arith.constant 0 : i32
    return %c0_i32, %arg0 : i32, i32
  }
  func.func @transform_3(%arg0: i32) -> (i32, i32) {
    %c0_i32 = arith.constant 0 : i32
    %c0_i32_0 = arith.constant 0 : i32
    %c0_i32_1 = arith.constant 0 : i32
    return %c0_i32, %c0_i32_0 : i32, i32
  }
  func.func @transform_4(%arg0: i32) -> (i32, i32) {
    %c0_i32 = arith.constant 0 : i32
    %c0_i32_0 = arith.constant 0 : i32
    %c0_i32_1 = arith.constant 0 : i32
    return %c0_i32, %c0_i32_0 : i32, i32
  }
  func.func @transform_5(%arg0: i32) -> (i32, i32, i32) {
    %c0_i32 = arith.constant 0 : i32
    %c0_i32_0 = arith.constant 0 : i32
    %c0_i32_1 = arith.constant 0 : i32
    %c0_i32_2 = arith.constant 0 : i32
    return %c0_i32, %c0_i32_0, %c0_i32_1 : i32, i32, i32
  }
}

</mosaic_0001>

<bundles_post_ra>
// kernel: tpu_custom_call.1
= control target key start
LH: loop header
LB: loop body
LE: loop exit
PB: predicated region body
PF: predicated region fallthrough
CT: control target
= control target key end

     0   :  { %10 = vsyncpa [#allocation3], 0  ;;  %s1133_s0 = inlined_call_operand.hbm [shape: f32[2,256,256], index: 0, kind: input, shape index: {}]   ;;  %s1134_s1 = inlined_call_operand.vmem [shape: f32[2,1,256], index: 1, kind: input, shape index: {}]   ;;  %s1135_s2 = inlined_call_operand.vmem [shape: f32[32,256], index: 2, kind: input, shape index: {}]   ;;  %s1136_s3 = inlined_call_operand.vmem [shape: f32[32,1], index: 3, kind: input, shape index: {}]   ;;  %s1137_s4 = inlined_call_operand.vmem [shape: f32[32,1], index: 4, kind: input, shape index: {}]   ;;  %s1138_s5 = inlined_call_operand.hbm [shape: f32[2,32,256], index: 5, kind: output, shape index: {}]  }
   0x1   :  { %11 = vsyncpa [#allocation4], 0  ;;  %s912_s18 = smov [#allocation2]   ;;  %s864_s22 = scalar_lea.hbm %s1133_s0, 16384 }
   0x2   :  { %s17_s19 = sshll.u32 %s912_s18, 4  ;;  %p865_p0 = scmp.ne.s32.totalorder %s1133_s0, %s864_s22  ;;  %s18_s19 = int_to_ptr.vmem [resolvable:$true] %s17_s19 }
   0x3   :  { %p868_p1 = scmp.lt.u32.totalorder %s864_s22, %s1133_s0 }
   0x5   :  { %p870_p2 = pnand %p868_p1, %p865_p0 }
   0x7   :  { %873 = shalt.err (!%p870_p2)
}
   0x8   :  { %s874_s27 = scalar_lea.vmem %s18_s19, 16384  ;;  %p879_p4 = scmp.lt.s32.totalorder %s18_s19, %s18_s19 }
   0x9   :  { %p875_p3 = scmp.ne.s32.totalorder %s18_s19, %s874_s27  ;;  %p880_p5 = scmp.lt.s32.totalorder %s874_s27, %s874_s27 }
   0xb   :  { %p881_p6 = por %p880_p5, %p879_p4 }
   0xd   :  { %p882_p7 = pnand %p881_p6, %p875_p3 }
   0xf   :  { %885 = shalt.err (!%p882_p7)
}
  0x10   :  { %s913_s28 = smov 256   ;;  %s914_s29 = smov 16  }
  0x11   :  { %23 = dma.hbm_to_vmem [thread:$0]  %s1133_s0, 16384, %s18_s19, [#allocation3], %s913_s28, %s913_s28, %s914_s29  }
  0x12   :  { %908 = dma.done.wait [#allocation3], 16384  }
  0x13   :  { %909 = vsyncadd [#allocation3], 4294950912  ;;  %v90_v0 = vld [vmem:[#allocation2 + $0x8] sm:$0xff]  ;;  %v92_v1 = vld [vmem:[#allocation2 + $0x18] sm:$0xff] }
  0x14   :  { %v89_v2 = vld [vmem:[#allocation2] sm:$0xff]  ;;  %v712_v3 = vpack.c.bf16 %v92_v1, %v90_v0  ;;  %v91_v4 = vld [vmem:[#allocation2 + $0x10] sm:$0xff]  ;;  %v295_v5 = vld [vmem:[#allocation2 + $0x208] sm:$0xff] }
  0x15   :  { %v297_v6 = vld [vmem:[#allocation2 + $0x218] sm:$0xff]  ;;  %v714_v7 = vpack.c.bf16 %v91_v4, %v89_v2  ;;  %v294_v9 = vld [vmem:[#allocation2 + $0x200] sm:$0xff]  ;;  %v296_v10 = vld [vmem:[#allocation2 + $0x210] sm:$0xff] }
  0x16   :  { %v776_v8 = vpack.c.bf16 %v297_v6, %v295_v5  ;;  %v94_v11 = vld [vmem:[#allocation2 + $0x28] sm:$0xff]  ;;  %713 = vmatprep.subr.bf16.mxu0 %v712_v3  ;;  %v778_v12 = vpack.c.bf16 %v296_v10, %v294_v9  ;;  %v96_v13 = vld [vmem:[#allocation2 + $0x38] sm:$0xff]  ;;  %v93_v14 = vld [vmem:[#allocation2 + $0x20] sm:$0xff] }
  0x17   :  { %v95_v15 = vld [vmem:[#allocation2 + $0x30] sm:$0xff]  ;;  %715 = vmatpush1.bf16.msra.mxu0 %v714_v7  ;;  %v716_v16 = vpack.c.bf16 %v96_v13, %v94_v11  ;;  %v299_v18 = vld [vmem:[#allocation2 + $0x228] sm:$0xff]  ;;  %v301_v19 = vld [vmem:[#allocation2 + $0x238] sm:$0xff] }
  0x18   :  { %777 = vmatprep.subr.bf16.mxu1 %v776_v8  ;;  %v718_v17 = vpack.c.bf16 %v95_v15, %v93_v14  ;;  %v298_v20 = vld [vmem:[#allocation2 + $0x220] sm:$0xff]  ;;  %v780_v21 = vpack.c.bf16 %v301_v19, %v299_v18  ;;  %v300_v22 = vld [vmem:[#allocation2 + $0x230] sm:$0xff]  ;;  %v98_v23 = vld [vmem:[#allocation2 + $0x48] sm:$0xff] }
  0x19   :  { %779 = vmatpush1.bf16.msra.mxu1 %v778_v12  ;;  %v100_v24 = vld [vmem:[#allocation2 + $0x58] sm:$0xff]  ;;  %717 = vmatprep.subr.bf16.mxu0 %v716_v16  ;;  %v782_v25 = vpack.c.bf16 %v300_v22, %v298_v20  ;;  %v97_v27 = vld [vmem:[#allocation2 + $0x40] sm:$0xff]  ;;  %v99_v28 = vld [vmem:[#allocation2 + $0x50] sm:$0xff] }
  0x1a   :  { %v720_v26 = vpack.c.bf16 %v100_v24, %v98_v23  ;;  %v303_v29 = vld [vmem:[#allocation2 + $0x248] sm:$0xff]  ;;  %781 = vmatprep.subr.bf16.mxu1 %v780_v21  ;;  %v305_v30 = vld [vmem:[#allocation2 + $0x258] sm:$0xff]  ;;  %v302_v31 = vld [vmem:[#allocation2 + $0x240] sm:$0xff]  ;;  %v722_v33 = vpack.c.bf16 %v99_v28, %v97_v27 }
  0x1b   :  { %v304_v32 = vld [vmem:[#allocation2 + $0x250] sm:$0xff]  ;;  %719 = vmatpush1.bf16.msra.mxu0 %v718_v17  ;;  %v784_v34 = vpack.c.bf16 %v305_v30, %v303_v29  ;;  %v102_v35 = vld [vmem:[#allocation2 + $0x68] sm:$0xff]  ;;  %v104_v36 = vld [vmem:[#allocation2 + $0x78] sm:$0xff] }
  0x1c   :  { %v101_v37 = vld [vmem:[#allocation2 + $0x60] sm:$0xff]  ;;  %721 = vmatprep.subr.bf16.mxu0 %v720_v26  ;;  %v786_v38 = vpack.c.bf16 %v304_v32, %v302_v31  ;;  %v724_v39 = vpack.c.bf16 %v104_v36, %v102_v35  ;;  %v103_v40 = vld [vmem:[#allocation2 + $0x70] sm:$0xff]  ;;  %v307_v41 = vld [vmem:[#allocation2 + $0x268] sm:$0xff] }
  0x1d   :  { %783 = vmatpush1.bf16.msra.mxu1 %v782_v25  ;;  %v309_v42 = vld [vmem:[#allocation2 + $0x278] sm:$0xff]  ;;  %v306_v44 = vld [vmem:[#allocation2 + $0x260] sm:$0xff]  ;;  %v308_v45 = vld [vmem:[#allocation2 + $0x270] sm:$0xff]  ;;  %v726_v48 = vpack.c.bf16 %v103_v40, %v101_v37 }
  0x1e   :  { %785 = vmatprep.subr.bf16.mxu1 %v784_v34  ;;  %v788_v43 = vpack.c.bf16 %v309_v42, %v307_v41  ;;  %v106_v46 = vld [vmem:[#allocation2 + $0x88] sm:$0xff]  ;;  %v108_v47 = vld [vmem:[#allocation2 + $0x98] sm:$0xff]  ;;  %v790_v51 = vpack.c.bf16 %v308_v45, %v306_v44  ;;  %v105_v53 = vld [vmem:[#allocation2 + $0x80] sm:$0xff] }
  0x1f   :  { %723 = vmatpush1.bf16.msra.mxu0 %v722_v33  ;;  %v311_v49 = vld [vmem:[#allocation2 + $0x288] sm:$0xff]  ;;  %v313_v50 = vld [vmem:[#allocation2 + $0x298] sm:$0xff]  ;;  %v728_v52 = vpack.c.bf16 %v108_v47, %v106_v46  ;;  %v107_v54 = vld [vmem:[#allocation2 + $0x90] sm:$0xff] }
  0x20   :  { %725 = vmatprep.subr.bf16.mxu0 %v724_v39  ;;  %v310_v55 = vld [vmem:[#allocation2 + $0x280] sm:$0xff]  ;;  %v792_v56 = vpack.c.bf16 %v313_v50, %v311_v49  ;;  %v312_v57 = vld [vmem:[#allocation2 + $0x290] sm:$0xff]  ;;  %v110_v58 = vld [vmem:[#allocation2 + $0xa8] sm:$0xff]  ;;  %v730_v62 = vpack.c.bf16 %v107_v54, %v105_v53 }
  0x21   :  { %787 = vmatpush1.bf16.msra.mxu1 %v786_v38  ;;  %v112_v59 = vld [vmem:[#allocation2 + $0xb8] sm:$0xff]  ;;  %v315_v60 = vld [vmem:[#allocation2 + $0x2a8] sm:$0xff]  ;;  %v794_v63 = vpack.c.bf16 %v312_v57, %v310_v55  ;;  %v109_v1 = vld [vmem:[#allocation2 + $0xa0] sm:$0xff] }
  0x22   :  { %789 = vmatprep.subr.bf16.mxu1 %v788_v43  ;;  %v317_v61 = vld [vmem:[#allocation2 + $0x2b8] sm:$0xff]  ;;  %v732_v0 = vpack.c.bf16 %v112_v59, %v110_v58  ;;  %v111_v2 = vld [vmem:[#allocation2 + $0xb0] sm:$0xff]  ;;  %v314_v3 = vld [vmem:[#allocation2 + $0x2a0] sm:$0xff] }
  0x23   :  { %727 = vmatpush1.bf16.msra.mxu0 %v726_v48  ;;  %v796_v4 = vpack.c.bf16 %v317_v61, %v315_v60  ;;  %v316_v5 = vld [vmem:[#allocation2 + $0x2b0] sm:$0xff]  ;;  %v114_v6 = vld [vmem:[#allocation2 + $0xc8] sm:$0xff]  ;;  %v116_v7 = vld [vmem:[#allocation2 + $0xd8] sm:$0xff]  ;;  %v734_v10 = vpack.c.bf16 %v111_v2, %v109_v1 }
  0x24   :  { %729 = vmatprep.subr.bf16.mxu0 %v728_v52  ;;  %v319_v8 = vld [vmem:[#allocation2 + $0x2c8] sm:$0xff]  ;;  %v321_v9 = vld [vmem:[#allocation2 + $0x2d8] sm:$0xff]  ;;  %v798_v11 = vpack.c.bf16 %v316_v5, %v314_v3  ;;  %v736_v12 = vpack.c.bf16 %v116_v7, %v114_v6  ;;  %v113_v13 = vld [vmem:[#allocation2 + $0xc0] sm:$0xff] }
  0x25   :  { %791 = vmatpush1.bf16.msra.mxu1 %v790_v51  ;;  %v115_v14 = vld [vmem:[#allocation2 + $0xd0] sm:$0xff]  ;;  %v318_v15 = vld [vmem:[#allocation2 + $0x2c0] sm:$0xff]  ;;  %v800_v16 = vpack.c.bf16 %v321_v9, %v319_v8  ;;  %v118_v18 = vld [vmem:[#allocation2 + $0xe8] sm:$0xff] }
  0x26   :  { %793 = vmatprep.subr.bf16.mxu1 %v792_v56  ;;  %v320_v17 = vld [vmem:[#allocation2 + $0x2d0] sm:$0xff]  ;;  %v120_v19 = vld [vmem:[#allocation2 + $0xf8] sm:$0xff]  ;;  %v323_v20 = vld [vmem:[#allocation2 + $0x2e8] sm:$0xff]  ;;  %v738_v22 = vpack.c.bf16 %v115_v14, %v113_v13 }
  0x27   :  { %731 = vmatpush1.bf16.msra.mxu0 %v730_v62  ;;  %v325_v21 = vld [vmem:[#allocation2 + $0x2f8] sm:$0xff]  ;;  %v802_v23 = vpack.c.bf16 %v320_v17, %v318_v15  ;;  %v740_v24 = vpack.c.bf16 %v120_v19, %v118_v18  ;;  %v117_v25 = vld [vmem:[#allocation2 + $0xe0] sm:$0xff]  ;;  %v119_v26 = vld [vmem:[#allocation2 + $0xf0] sm:$0xff] }
  0x28   :  { %733 = vmatprep.subr.bf16.mxu0 %v732_v0  ;;  %v322_v27 = vld [vmem:[#allocation2 + $0x2e0] sm:$0xff]  ;;  %v804_v28 = vpack.c.bf16 %v325_v21, %v323_v20  ;;  %v324_v29 = vld [vmem:[#allocation2 + $0x2f0] sm:$0xff]  ;;  %v122_v30 = vld [vmem:[#allocation2 + $0x108] sm:$0xff]  ;;  %v742_v34 = vpack.c.bf16 %v119_v26, %v117_v25 }
  0x29   :  { %795 = vmatpush1.bf16.msra.mxu1 %v794_v63  ;;  %v124_v31 = vld [vmem:[#allocation2 + $0x118] sm:$0xff]  ;;  %v327_v32 = vld [vmem:[#allocation2 + $0x308] sm:$0xff]  ;;  %v806_v35 = vpack.c.bf16 %v324_v29, %v322_v27  ;;  %v121_v37 = vld [vmem:[#allocation2 + $0x100] sm:$0xff] }
  0x2a   :  { %797 = vmatprep.subr.bf16.mxu1 %v796_v4  ;;  %v329_v33 = vld [vmem:[#allocation2 + $0x318] sm:$0xff]  ;;  %v744_v36 = vpack.c.bf16 %v124_v31, %v122_v30  ;;  %v123_v38 = vld [vmem:[#allocation2 + $0x110] sm:$0xff]  ;;  %v326_v39 = vld [vmem:[#allocation2 + $0x300] sm:$0xff] }
  0x2b   :  { %735 = vmatpush1.bf16.msra.mxu0 %v734_v10  ;;  %v808_v40 = vpack.c.bf16 %v329_v33, %v327_v32  ;;  %v328_v41 = vld [vmem:[#allocation2 + $0x310] sm:$0xff]  ;;  %v126_v42 = vld [vmem:[#allocation2 + $0x128] sm:$0xff]  ;;  %v128_v43 = vld [vmem:[#allocation2 + $0x138] sm:$0xff]  ;;  %v746_v46 = vpack.c.bf16 %v123_v38, %v121_v37 }
  0x2c   :  { %737 = vmatprep.subr.bf16.mxu0 %v736_v12  ;;  %v331_v44 = vld [vmem:[#allocation2 + $0x328] sm:$0xff]  ;;  %v333_v45 = vld [vmem:[#allocation2 + $0x338] sm:$0xff]  ;;  %v810_v47 = vpack.c.bf16 %v328_v41, %v326_v39  ;;  %v748_v48 = vpack.c.bf16 %v128_v43, %v126_v42  ;;  %v125_v49 = vld [vmem:[#allocation2 + $0x120] sm:$0xff] }
  0x2d   :  { %799 = vmatpush1.bf16.msra.mxu1 %v798_v11  ;;  %v127_v50 = vld [vmem:[#allocation2 + $0x130] sm:$0xff]  ;;  %v330_v51 = vld [vmem:[#allocation2 + $0x320] sm:$0xff]  ;;  %v812_v52 = vpack.c.bf16 %v333_v45, %v331_v44  ;;  %v130_v54 = vld [vmem:[#allocation2 + $0x148] sm:$0xff] }
  0x2e   :  { %801 = vmatprep.subr.bf16.mxu1 %v800_v16  ;;  %v332_v53 = vld [vmem:[#allocation2 + $0x330] sm:$0xff]  ;;  %v132_v55 = vld [vmem:[#allocation2 + $0x158] sm:$0xff]  ;;  %v335_v56 = vld [vmem:[#allocation2 + $0x348] sm:$0xff]  ;;  %v750_v58 = vpack.c.bf16 %v127_v50, %v125_v49 }
  0x2f   :  { %739 = vmatpush1.bf16.msra.mxu0 %v738_v22  ;;  %v337_v57 = vld [vmem:[#allocation2 + $0x358] sm:$0xff]  ;;  %v814_v59 = vpack.c.bf16 %v332_v53, %v330_v51  ;;  %v752_v60 = vpack.c.bf16 %v132_v55, %v130_v54  ;;  %v129_v61 = vld [vmem:[#allocation2 + $0x140] sm:$0xff]  ;;  %v131_v62 = vld [vmem:[#allocation2 + $0x150] sm:$0xff] }
  0x30   :  { %741 = vmatprep.subr.bf16.mxu0 %v740_v24  ;;  %v334_v63 = vld [vmem:[#allocation2 + $0x340] sm:$0xff]  ;;  %v816_v0 = vpack.c.bf16 %v337_v57, %v335_v56  ;;  %v336_v1 = vld [vmem:[#allocation2 + $0x350] sm:$0xff]  ;;  %v134_v2 = vld [vmem:[#allocation2 + $0x168] sm:$0xff]  ;;  %v754_v6 = vpack.c.bf16 %v131_v62, %v129_v61 }
  0x31   :  { %803 = vmatpush1.bf16.msra.mxu1 %v802_v23  ;;  %v136_v3 = vld [vmem:[#allocation2 + $0x178] sm:$0xff]  ;;  %v339_v4 = vld [vmem:[#allocation2 + $0x368] sm:$0xff]  ;;  %v133_v7 = vld [vmem:[#allocation2 + $0x160] sm:$0xff]  ;;  %v818_v8 = vpack.c.bf16 %v336_v1, %v334_v63 }
  0x32   :  { %805 = vmatprep.subr.bf16.mxu1 %v804_v28  ;;  %v341_v5 = vld [vmem:[#allocation2 + $0x378] sm:$0xff]  ;;  %v756_v9 = vpack.c.bf16 %v136_v3, %v134_v2  ;;  %v135_v10 = vld [vmem:[#allocation2 + $0x170] sm:$0xff]  ;;  %v338_v11 = vld [vmem:[#allocation2 + $0x360] sm:$0xff]  ;;  %v71_v2 = vlaneseq }
  0x33   :  { %743 = vmatpush1.bf16.msra.mxu0 %v742_v34  ;;  %v340_v12 = vld [vmem:[#allocation2 + $0x370] sm:$0xff]  ;;  %v820_v13 = vpack.c.bf16 %v341_v5, %v339_v4  ;;  %v138_v14 = vld [vmem:[#allocation2 + $0x188] sm:$0xff]  ;;  %v140_v15 = vld [vmem:[#allocation2 + $0x198] sm:$0xff]  ;;  %v758_v21 = vpack.c.bf16 %v135_v10, %v133_v7 }
  0x34   :  { %745 = vmatprep.subr.bf16.mxu0 %v744_v36  ;;  %v63_v16 = vld [vmem:[%s1134_s1] sm:$0x3]  ;;  %v343_v17 = vld [vmem:[#allocation2 + $0x388] sm:$0xff]  ;;  %v345_v18 = vld [vmem:[#allocation2 + $0x398] sm:$0xff]  ;;  %v822_v23 = vpack.c.bf16 %v340_v12, %v338_v11  ;;  %v760_v24 = vpack.c.bf16 %v140_v15, %v138_v14 }
  0x35   :  { %807 = vmatpush1.bf16.msra.mxu1 %v806_v35  ;;  %v709_v19 = vmul.f32 -1.442695, %v63_v16  ;;  %v710_v20 = vld [vmem:[%s1134_s1 + $0x2] sm:$0x3]  ;;  %v139_v26 = vld [vmem:[#allocation2 + $0x190] sm:$0xff]  ;;  %v824_v28 = vpack.c.bf16 %v345_v18, %v343_v17  ;;  %v142_v30 = vld [vmem:[#allocation2 + $0x1a8] sm:$0xff] }
  0x36   :  { %809 = vmatprep.subr.bf16.mxu1 %v808_v40  ;;  %v711_v22 = vmul.f32 -1.442695, %v710_v20  ;;  %v137_v25 = vld [vmem:[#allocation2 + $0x180] sm:$0xff]  ;;  %v344_v29 = vld [vmem:[#allocation2 + $0x390] sm:$0xff]  ;;  %v144_v31 = vld [vmem:[#allocation2 + $0x1b8] sm:$0xff] }
  0x37   :  { %747 = vmatpush1.bf16.msra.mxu0 %v746_v46  ;;  %v342_v27 = vld [vmem:[#allocation2 + $0x380] sm:$0xff]  ;;  %848 = vpow2.f32 %v709_v19  ;;  %v347_v32 = vld [vmem:[#allocation2 + $0x3a8] sm:$0xff]  ;;  %v349_v33 = vld [vmem:[#allocation2 + $0x3b8] sm:$0xff]  ;;  %v762_v34 = vpack.c.bf16 %v139_v26, %v137_v25  ;;  %v764_v36 = vpack.c.bf16 %v144_v31, %v142_v30 }
  0x38   :  { %749 = vmatprep.subr.bf16.mxu0 %v748_v48  ;;  %850 = vpow2.f32 %v711_v22  ;;  %v826_v35 = vpack.c.bf16 %v344_v29, %v342_v27  ;;  %v141_v37 = vld [vmem:[#allocation2 + $0x1a0] sm:$0xff]  ;;  %v143_v38 = vld [vmem:[#allocation2 + $0x1b0] sm:$0xff]  ;;  %v828_v40 = vpack.c.bf16 %v349_v33, %v347_v32  ;;  %v146_v42 = vld [vmem:[#allocation2 + $0x1c8] sm:$0xff] }
  0x39   :  { %811 = vmatpush1.bf16.msra.mxu1 %v810_v47  ;;  %v346_v39 = vld [vmem:[#allocation2 + $0x3a0] sm:$0xff]  ;;  %v348_v41 = vld [vmem:[#allocation2 + $0x3b0] sm:$0xff]  ;;  %v148_v43 = vld [vmem:[#allocation2 + $0x1d8] sm:$0xff]  ;;  %v766_v46 = vpack.c.bf16 %v143_v38, %v141_v37 }
  0x3a   :  { %813 = vmatprep.subr.bf16.mxu1 %v812_v52  ;;  %v351_v44 = vld [vmem:[#allocation2 + $0x3c8] sm:$0xff]  ;;  %v353_v45 = vld [vmem:[#allocation2 + $0x3d8] sm:$0xff]  ;;  %v830_v47 = vpack.c.bf16 %v348_v41, %v346_v39  ;;  %v768_v48 = vpack.c.bf16 %v148_v43, %v146_v42  ;;  %v145_v49 = vld [vmem:[#allocation2 + $0x1c0] sm:$0xff] }
  0x3b   :  { %751 = vmatpush1.bf16.msra.mxu0 %v750_v58  ;;  %v147_v50 = vld [vmem:[#allocation2 + $0x1d0] sm:$0xff]  ;;  %v350_v51 = vld [vmem:[#allocation2 + $0x3c0] sm:$0xff]  ;;  %v832_v52 = vpack.c.bf16 %v353_v45, %v351_v44  ;;  %v150_v54 = vld [vmem:[#allocation2 + $0x1e8] sm:$0xff] }
  0x3c   :  { %753 = vmatprep.subr.bf16.mxu0 %v752_v60  ;;  %v352_v53 = vld [vmem:[#allocation2 + $0x3d0] sm:$0xff]  ;;  %v152_v55 = vld [vmem:[#allocation2 + $0x1f8] sm:$0xff]  ;;  %v355_v57 = vld [vmem:[#allocation2 + $0x3e8] sm:$0xff]  ;;  %v770_v60 = vpack.c.bf16 %v147_v50, %v145_v49 }
  0x3d   :  { %815 = vmatpush1.bf16.msra.mxu1 %v814_v59  ;;  %v357_v58 = vld [vmem:[#allocation2 + $0x3f8] sm:$0xff]  ;;  %v834_v62 = vpack.c.bf16 %v352_v53, %v350_v51  ;;  %v772_v63 = vpack.c.bf16 %v152_v55, %v150_v54  ;;  %v151_v1 = vld [vmem:[#allocation2 + $0x1f0] sm:$0xff]  ;;  %v354_v5 = vld [vmem:[#allocation2 + $0x3e0] sm:$0xff] }
  0x3e   :  { %817 = vmatprep.subr.bf16.mxu1 %v816_v0  ;;  %v149_v0 = vld [vmem:[#allocation2 + $0x1e0] sm:$0xff]  ;;  %v836_v4 = vpack.c.bf16 %v357_v58, %v355_v57  ;;  %v58_v15 = vld [vmem:[%s1135_s2 + $0x18] sm:$0xff]  ;;  %v61_v38 = vld [vmem:[%s1135_s2 + $0x30] sm:$0xff] }
  0x3f   :  { %755 = vmatpush1.bf16.msra.mxu0 %v754_v6  ;;  %v356_v6 = vld [vmem:[#allocation2 + $0x3f0] sm:$0xff]  ;;  %v774_v7 = vpack.c.bf16 %v151_v1, %v149_v0  ;;  %v55_v14 = vld [vmem:[%s1135_s2] sm:$0xff] }
  0x40   :  { %757 = vmatprep.subr.bf16.mxu0 %v756_v9  ;;  %v838_v9 = vpack.c.bf16 %v356_v6, %v354_v5  ;;  %v59_v32 = vld [vmem:[%s1135_s2 + $0x20] sm:$0xff]  ;;  %v915_v6 = vmov 0  }
  0x41   :  { %819 = vmatpush1.bf16.msra.mxu1 %v818_v8  ;;  %v849_v56 = vpop.eup %848  ;;  %v72_v8 = vshrl.u32 %v71_v2, 7  ;;  %847 = vset.pattern.permute.xlu1 %v915_v6 }
  0x42   :  { %821 = vmatprep.subr.bf16.mxu1 %v820_v13  ;;  %v851_v59 = vpop.eup %850  ;;  %v67_v61 = vadd.f32 1.0, %v849_v56  ;;  %v56_v13 = vld [vmem:[%s1135_s2 + $0x8] sm:$0xff]  ;;  %846 = vset.pattern.permute.xlu0 %v915_v6 }
  0x43   :  { %759 = vmatpush1.bf16.msra.mxu0 %v758_v21  ;;  %v271_v3 = vadd.f32 1.0, %v851_v59  ;;  %v77_v10 = vsub.s32 1, %v72_v8  ;;  %v73_v11 = vsub.s32 0, %v72_v8 }
  0x44   :  { %761 = vmatprep.subr.bf16.mxu0 %v760_v24  ;;  %852 = vrcp.f32 %v67_v61  ;;  %v57_v24 = vld [vmem:[%s1135_s2 + $0x10] sm:$0xff] }
  0x45   :  { %823 = vmatpush1.bf16.msra.mxu1 %v822_v23  ;;  %854 = vrcp.f32 %v271_v3 }
  0x46   :  { %825 = vmatprep.subr.bf16.mxu1 %v824_v28  ;;  %v60_v28 = vld [vmem:[%s1135_s2 + $0x28] sm:$0xff] }
  0x47   :  { %763 = vmatpush1.bf16.msra.mxu0 %v762_v34  ;;  %v62_v34 = vld [vmem:[%s1135_s2 + $0x38] sm:$0xff] }
  0x48   :  { %765 = vmatprep.subr.bf16.mxu0 %v764_v36 }
  0x49   :  { %827 = vmatpush1.bf16.msra.mxu1 %v826_v35 }
  0x4a   :  { %829 = vmatprep.subr.bf16.mxu1 %v828_v40 }
  0x4b   :  { %767 = vmatpush1.bf16.msra.mxu0 %v766_v46 }
  0x4c   :  { %769 = vmatprep.subr.bf16.mxu0 %v768_v48 }
  0x4d   :  { %831 = vmatpush1.bf16.msra.mxu1 %v830_v47 }
  0x4e   :  { %833 = vmatprep.subr.bf16.mxu1 %v832_v52  ;;  %v853_v12 = vpop.eup %852 }
  0x4f   :  { %771 = vmatpush1.bf16.msra.mxu0 %v770_v60  ;;  %v855_v16 = vpop.eup %854  ;;  %v78_v17 = vrot.slane %v853_v12, %v77_v10  ;;  %v74_v18 = vrot.slane %v853_v12, %v73_v11 }
  0x50   :  { %773 = vmatprep.subr.bf16.mxu0 %v772_v63  ;;  %v282_v19 = vrot.slane %v855_v16, %v77_v10  ;;  %v278_v20 = vrot.slane %v855_v16, %v73_v11 }
  0x51   :  { %835 = vmatpush1.bf16.msra.mxu1 %v834_v62  ;;  %v82_v21 = vmul.f32 %v78_v17, %v56_v13  ;;  %v81_v22 = vmul.f32 %v74_v18, %v55_v14  ;;  %v84_v23 = vmul.f32 %v78_v17, %v58_v15  ;;  %v83_v29 = vmul.f32 %v74_v18, %v57_v24 }
  0x52   :  { %837 = vmatprep.subr.bf16.mxu1 %v836_v4  ;;  %v286_v25 = vmul.f32 %v282_v19, %v56_v13  ;;  %v285_v26 = vmul.f32 %v278_v20, %v55_v14  ;;  %v288_v27 = vmul.f32 %v282_v19, %v58_v15  ;;  %v287_v30 = vmul.f32 %v278_v20, %v57_v24 }
  0x53   :  { %775 = vmatpush1.bf16.msra.mxu0 %v774_v7  ;;  %225 = vmatprep.mubr.f32.mxu0 %v82_v21  ;;  %v86_v31 = vmul.f32 %v78_v17, %v60_v28  ;;  %v290_v33 = vmul.f32 %v282_v19, %v60_v28  ;;  %v85_v35 = vmul.f32 %v74_v18, %v59_v32 }
  0x54   :  { %431 = vmatprep.mubr.f32.mxu1 %v286_v25  ;;  %v88_v36 = vmul.f32 %v78_v17, %v62_v34  ;;  %v289_v37 = vmul.f32 %v278_v20, %v59_v32  ;;  %v292_v39 = vmul.f32 %v282_v19, %v62_v34  ;;  %v87_v40 = vmul.f32 %v74_v18, %v61_v38 }
  0x55   :  { %839 = vmatpush1.bf16.msra.mxu1 %v838_v9  ;;  %v291_v41 = vmul.f32 %v278_v20, %v61_v38 }
  0x56   :  { %226 = vmatmul.mubr.f32.vlgmr.msra.gmra.mrb[0].mxu0 %v81_v22 }
  0x57   :  { %231 = vmatprep.mubr.f32.mxu0 %v84_v23 }
  0x58   :  { %432 = vmatmul.mubr.f32.vlgmr.msra.gmra.mrb[0].mxu1 %v285_v26 }
  0x59   :  { %437 = vmatprep.mubr.f32.mxu1 %v288_v27 }
  0x5a   :  { %232 = vmatmul.mubr.f32.gmra.mrb[2].mxu0 %v83_v29 }
  0x5b   :  { %237 = vmatprep.mubr.f32.mxu0 %v86_v31 }
  0x5c   :  { %438 = vmatmul.mubr.f32.gmra.mrb[2].mxu1 %v287_v30 }
  0x5d   :  { %443 = vmatprep.mubr.f32.mxu1 %v290_v33 }
  0x5e   :  { %238 = vmatmul.mubr.f32.gmra.mrb[4].mxu0 %v85_v35 }
  0x5f   :  { %243 = vmatprep.mubr.f32.mxu0 %v88_v36 }
  0x60   :  { %444 = vmatmul.mubr.f32.gmra.mrb[4].mxu1 %v289_v37 }
  0x61   :  { %449 = vmatprep.mubr.f32.mxu1 %v292_v39 }
  0x62   :  { %244 = vmatmul.mubr.f32.gmra.mrb[6].mxu0 %v87_v40 }
  0x64   :  { %450 = vmatmul.mubr.f32.gmra.mrb[6].mxu1 %v291_v41 }
 0x129   :  { %v227_v42 = vpop.f32.mrb[0].mxu0 }
 0x12a   :  { %v229_v43 = vpop.f32.mrb[1].mxu0 }
 0x12b   :  { %v433_v44 = vpop.f32.mrb[0].mxu1  ;;  %v491_v47 = vadd.f32 %v229_v43, %v227_v42 }
 0x12c   :  { %v435_v45 = vpop.f32.mrb[1].mxu1 }
 0x12d   :  { %v233_v46 = vpop.f32.mrb[2].mxu0  ;;  %v492_v51 = vadd.f32 %v491_v47, %v433_v44  ;;  %v598_v47 = vld [vmem:[%s1136_s3 + $0x10] sm:$0xff] }
 0x12e   :  { %v235_v48 = vpop.f32.mrb[3].mxu0 }
 0x12f   :  { %v439_v49 = vpop.f32.mrb[2].mxu1  ;;  %v493_v53 = vadd.f32 %v492_v51, %v435_v45  ;;  %v496_v54 = vadd.f32 %v235_v48, %v233_v46  ;;  %v637_v51 = vld [vmem:[%s1137_s4 + $0x8] sm:$0xff] }
 0x130   :  { %v441_v50 = vpop.f32.mrb[3].mxu1 }
 0x131   :  { %v239_v52 = vpop.f32.mrb[4].mxu0  ;;  %494 = vadd.xlane.f32.xlu0 %v493_v53  ;;  %v497_v58 = vadd.f32 %v496_v54, %v439_v49 }
 0x132   :  { %v241_v55 = vpop.f32.mrb[5].mxu0 }
 0x133   :  { %v445_v56 = vpop.f32.mrb[4].mxu1  ;;  %v498_v60 = vadd.f32 %v497_v58, %v441_v50  ;;  %v501_v61 = vadd.f32 %v241_v55, %v239_v52 }
 0x134   :  { %v447_v57 = vpop.f32.mrb[5].mxu1 }
 0x135   :  { %v992_v59 = vpop.f32.mrb[6].mxu0  ;;  %499 = vadd.xlane.f32.xlu0 %v498_v60  ;;  %v502_v1 = vadd.f32 %v501_v61, %v445_v56 }
 0x136   :  { %v994_v62 = vpop.f32.mrb[7].mxu0 }
 0x137   :  { %v996_v63 = vpop.f32.mrb[6].mxu1  ;;  %v503_v2 = vadd.f32 %v502_v1, %v447_v57  ;;  %v506_v3 = vadd.f32 %v994_v62, %v992_v59 }
 0x138   :  { %v998_v0 = vpop.f32.mrb[7].mxu1 }
 0x139   :  { %504 = vadd.xlane.f32.xlu1 %v503_v2  ;;  %v507_v4 = vadd.f32 %v506_v3, %v996_v63 }
 0x13b   :  { %v508_v5 = vadd.f32 %v507_v4, %v998_v0  ;;  %v639_v4 = vld [vmem:[%s1137_s4 + $0x18] sm:$0xff] }
 0x13d   :  { %509 = vadd.xlane.f32.xlu1 %v508_v5 }
 0x1be   :  { %v495_v7 = vpop.xlane.xlu0 %494 }
 0x1bf   :  { %v512_v8 = vmul.f32 0.001953125, %v495_v7 }
 0x1c1   :  { %v1004_v9 = vsub.f32 %v227_v42, %v512_v8  ;;  %v1006_v10 = vsub.f32 %v229_v43, %v512_v8  ;;  %v1008_v11 = vsub.f32 %v433_v44, %v512_v8  ;;  %v1010_v13 = vsub.f32 %v435_v45, %v512_v8 }
 0x1c2   :  { %v500_v12 = vpop.xlane.xlu0 %499 }
 0x1c3   :  { %v513_v14 = vmul.f32 0.001953125, %v500_v12  ;;  %v532_v15 = vmul.f32 %v1004_v9, %v1004_v9  ;;  %v533_v16 = vmul.f32 %v1006_v10, %v1006_v10  ;;  %v540_v17 = vmul.f32 %v1008_v11, %v1008_v11 }
 0x1c4   :  { %v541_v23 = vmul.f32 %v1010_v13, %v1010_v13 }
 0x1c5   :  { %v1018_v18 = vsub.f32 %v233_v46, %v513_v14  ;;  %v1020_v19 = vsub.f32 %v235_v48, %v513_v14  ;;  %v548_v20 = vadd.f32 %v533_v16, %v532_v15  ;;  %v1022_v21 = vsub.f32 %v439_v49, %v513_v14  ;;  %v597_v46 = vld [vmem:[%s1136_s3 + $0x8] sm:$0xff]  ;;  %v599_v48 = vld [vmem:[%s1136_s3 + $0x18] sm:$0xff]  ;;  %v596_v49 = vld [vmem:[%s1136_s3] sm:$0xff] }
 0x1c6   :  { %v505_v22 = vpop.xlane.xlu1 %504  ;;  %v1026_v24 = vsub.f32 %v441_v50, %v513_v14  ;;  %v636_v50 = vld [vmem:[%s1137_s4] sm:$0xff] }
 0x1c7   :  { %v514_v25 = vmul.f32 0.001953125, %v505_v22  ;;  %v549_v26 = vadd.f32 %v548_v20, %v540_v17  ;;  %v534_v27 = vmul.f32 %v1018_v18, %v1018_v18  ;;  %v535_v28 = vmul.f32 %v1020_v19, %v1020_v19 }
 0x1c8   :  { %v542_v29 = vmul.f32 %v1022_v21, %v1022_v21  ;;  %v543_v34 = vmul.f32 %v1026_v24, %v1026_v24 }
 0x1c9   :  { %v1034_v30 = vsub.f32 %v239_v52, %v514_v25  ;;  %v1036_v31 = vsub.f32 %v241_v55, %v514_v25  ;;  %v550_v32 = vadd.f32 %v549_v26, %v541_v23  ;;  %v553_v33 = vadd.f32 %v535_v28, %v534_v27  ;;  %v638_v52 = vld [vmem:[%s1137_s4 + $0x10] sm:$0xff]  ;;  %s916_s4 = smov [#allocation5]  }
 0x1ca   :  { %v1040_v35 = vsub.f32 %v445_v56, %v514_v25  ;;  %v1042_v37 = vsub.f32 %v447_v57, %v514_v25  ;;  %v510_v53 = vpop.xlane.xlu1 %509  ;;  %s697_s14 = sshll.u32 %s916_s4, 4  ;;  %s698_s14 = int_to_ptr.vmem [resolvable:$true] %s697_s14 }
 0x1cb   :  { %551 = vadd.xlane.f32.xlu0 %v550_v32  ;;  %v554_v36 = vadd.f32 %v553_v33, %v542_v29  ;;  %v536_v38 = vmul.f32 %v1034_v30, %v1034_v30  ;;  %v537_v39 = vmul.f32 %v1036_v31, %v1036_v31  ;;  %v515_v54 = vmul.f32 0.001953125, %v510_v53  ;;  %s886_s15 = scalar_lea.vmem %s698_s14, 2048  ;;  %p891_p9 = scmp.lt.s32.totalorder %s698_s14, %s698_s14 }
 0x1cc   :  { %v544_v41 = vmul.f32 %v1040_v35, %v1040_v35  ;;  %v545_v43 = vmul.f32 %v1042_v37, %v1042_v37  ;;  %p887_p8 = scmp.ne.s32.totalorder %s698_s14, %s886_s15  ;;  %p892_p10 = scmp.lt.s32.totalorder %s886_s15, %s886_s15 }
 0x1cd   :  { %v555_v40 = vadd.f32 %v554_v36, %v543_v34  ;;  %v558_v42 = vadd.f32 %v537_v39, %v536_v38  ;;  %v1074_v55 = vsub.f32 %v992_v59, %v515_v54  ;;  %v1077_v56 = vsub.f32 %v994_v62, %v515_v54 }
 0x1ce   :  { %v1084_v60 = vsub.f32 %v996_v63, %v515_v54  ;;  %v1087_v1 = vsub.f32 %v998_v0, %v515_v54  ;;  %p893_p11 = por %p892_p10, %p891_p9 }
 0x1cf   :  { %556 = vadd.xlane.f32.xlu1 %v555_v40  ;;  %v559_v44 = vadd.f32 %v558_v42, %v544_v41  ;;  %v538_v57 = vmul.f32 %v1074_v55, %v1074_v55  ;;  %v539_v58 = vmul.f32 %v1077_v56, %v1077_v56 }
 0x1d0   :  { %v546_v59 = vmul.f32 %v1084_v60, %v1084_v60  ;;  %v547_v62 = vmul.f32 %v1087_v1, %v1087_v1  ;;  %p894_p12 = pnand %p893_p11, %p887_p8 }
 0x1d1   :  { %v560_v45 = vadd.f32 %v559_v44, %v545_v43  ;;  %v563_v61 = vadd.f32 %v539_v58, %v538_v57 }
 0x1d3   :  { %561 = vadd.xlane.f32.xlu0 %v560_v45  ;;  %v564_v2 = vadd.f32 %v563_v61, %v546_v59 }
 0x1d5   :  { %v565_v3 = vadd.f32 %v564_v2, %v547_v62 }
 0x1e0   :  { %607 = vperm.xlu1 %847, %v597_v46  }
 0x1e4   :  { %612 = vperm.xlu1 %847, %v598_v47  }
 0x1e8   :  { %617 = vperm.xlu1 %847, %v599_v48  }
 0x1e9   :  { %602 = vperm.xlu0 %846, %v596_v49  }
 0x1ec   :  { %642 = vperm.xlu1 %847, %v636_v50  }
 0x1f0   :  { %647 = vperm.xlu1 %847, %v637_v51  }
 0x1f4   :  { %652 = vperm.xlu1 %847, %v638_v52  }
 0x218   :  { %566 = vadd.xlane.f32.xlu1 %v565_v3 }
 0x229   :  { %657 = vperm.xlu1 %847, %v639_v4  }
 0x258   :  { %v552_v63 = vpop.xlane.xlu0 %551 }
 0x259   :  { %v568_v5 = vmul.f32 0.001953125, %v552_v63 }
 0x25b   :  { %v572_v6 = vadd.f32 1e-05, %v568_v5 }
 0x25c   :  { %v557_v7 = vpop.xlane.xlu1 %556 }
 0x25d   :  { %856 = vrsqrt.f32 %v572_v6  ;;  %v569_v0 = vmul.f32 0.001953125, %v557_v7 }
 0x25f   :  { %v573_v8 = vadd.f32 1e-05, %v569_v0 }
 0x260   :  { %v608_v12 = vpop.permute.xlu1 %607  ;;  %v562_v14 = vpop.xlane.xlu0 %561 }
 0x261   :  { %858 = vrsqrt.f32 %v573_v8  ;;  %v570_v15 = vmul.f32 0.001953125, %v562_v14 }
 0x263   :  { %v574_v16 = vadd.f32 1e-05, %v570_v15 }
 0x264   :  { %v613_v17 = vpop.permute.xlu1 %612 }
 0x265   :  { %860 = vrsqrt.f32 %v574_v16 }
 0x267   :  { %v857_v20 = vpop.eup %856 }
 0x268   :  { %v1096_v22 = vpop.permute.xlu1 %617  ;;  %v580_v23 = vmul.f32 %v857_v20, %v1004_v9  ;;  %v581_v25 = vmul.f32 %v857_v20, %v1006_v10  ;;  %v588_v26 = vmul.f32 %v857_v20, %v1008_v11  ;;  %v589_v27 = vmul.f32 %v857_v20, %v1010_v13  ;;  %v603_v28 = vpop.permute.xlu0 %602 }
 0x26a   :  { %v620_v29 = vmul.f32 %v603_v28, %v580_v23  ;;  %v621_v32 = vmul.f32 %v603_v28, %v581_v25  ;;  %v628_v33 = vmul.f32 %v603_v28, %v588_v26  ;;  %v629_v34 = vmul.f32 %v603_v28, %v589_v27 }
 0x26b   :  { %v859_v36 = vpop.eup %858 }
 0x26c   :  { %v582_v38 = vmul.f32 %v859_v36, %v1018_v18  ;;  %v583_v39 = vmul.f32 %v859_v36, %v1020_v19  ;;  %v590_v40 = vmul.f32 %v859_v36, %v1022_v21  ;;  %v591_v9 = vmul.f32 %v859_v36, %v1026_v24  ;;  %v643_v41 = vpop.permute.xlu1 %642 }
 0x26d   :  { %v660_v10 = vadd.f32 %v643_v41, %v620_v29  ;;  %v661_v42 = vadd.f32 %v643_v41, %v621_v32  ;;  %v668_v11 = vadd.f32 %v643_v41, %v628_v33  ;;  %v669_v43 = vadd.f32 %v643_v41, %v629_v34 }
 0x26e   :  { %v622_v13 = vmul.f32 %v608_v12, %v582_v38  ;;  %v623_v44 = vmul.f32 %v608_v12, %v583_v39  ;;  %v630_v45 = vmul.f32 %v608_v12, %v590_v40  ;;  %v631_v46 = vmul.f32 %v608_v12, %v591_v9 }
 0x26f   :  { %v861_v47 = vpop.eup %860  ;;  %676 = vst [vmem:[#allocation5] sm:$0xff] %v660_v10  ;;  %677 = vst [vmem:[#allocation5 + $0x8] sm:$0xff] %v661_v42 }
 0x270   :  { %684 = vst [vmem:[#allocation5 + $0x40] sm:$0xff] %v668_v11  ;;  %685 = vst [vmem:[#allocation5 + $0x48] sm:$0xff] %v669_v43  ;;  %v584_v18 = vmul.f32 %v861_v47, %v1034_v30  ;;  %v585_v19 = vmul.f32 %v861_v47, %v1036_v31  ;;  %v592_v21 = vmul.f32 %v861_v47, %v1040_v35  ;;  %v648_v48 = vpop.permute.xlu1 %647 }
 0x271   :  { %v593_v24 = vmul.f32 %v861_v47, %v1042_v37  ;;  %v662_v49 = vadd.f32 %v648_v48, %v622_v13  ;;  %v663_v50 = vadd.f32 %v648_v48, %v623_v44  ;;  %v670_v51 = vadd.f32 %v648_v48, %v630_v45 }
 0x272   :  { %v671_v52 = vadd.f32 %v648_v48, %v631_v46  ;;  %v624_v53 = vmul.f32 %v613_v17, %v584_v18  ;;  %v625_v54 = vmul.f32 %v613_v17, %v585_v19  ;;  %v632_v57 = vmul.f32 %v613_v17, %v592_v21 }
 0x273   :  { %v633_v58 = vmul.f32 %v613_v17, %v593_v24  ;;  %678 = vst [vmem:[#allocation5 + $0x10] sm:$0xff] %v662_v49  ;;  %679 = vst [vmem:[#allocation5 + $0x18] sm:$0xff] %v663_v50 }
 0x274   :  { %686 = vst [vmem:[#allocation5 + $0x50] sm:$0xff] %v670_v51  ;;  %687 = vst [vmem:[#allocation5 + $0x58] sm:$0xff] %v671_v52  ;;  %v653_v30 = vpop.permute.xlu1 %652 }
 0x275   :  { %v664_v61 = vadd.f32 %v653_v30, %v624_v53  ;;  %v665_v31 = vadd.f32 %v653_v30, %v625_v54  ;;  %v672_v59 = vadd.f32 %v653_v30, %v632_v57  ;;  %v673_v35 = vadd.f32 %v653_v30, %v633_v58 }
 0x277   :  { %680 = vst [vmem:[#allocation5 + $0x20] sm:$0xff] %v664_v61  ;;  %681 = vst [vmem:[#allocation5 + $0x28] sm:$0xff] %v665_v31 }
 0x278   :  { %688 = vst [vmem:[#allocation5 + $0x60] sm:$0xff] %v672_v59  ;;  %689 = vst [vmem:[#allocation5 + $0x68] sm:$0xff] %v673_v35 }
 0x2a5   :  { %v567_v37 = vpop.xlane.xlu1 %566 }
 0x2a6   :  { %v571_v2 = vmul.f32 0.001953125, %v567_v37 }
 0x2a8   :  { %v575_v62 = vadd.f32 1e-05, %v571_v2 }
 0x2a9   :  { %v658_v14 = vpop.permute.xlu1 %657 }
 0x2aa   :  { %862 = vrsqrt.f32 %v575_v62 }
 0x2b4   :  { %v863_v3 = vpop.eup %862 }
 0x2b5   :  { %v586_v4 = vmul.f32 %v863_v3, %v1074_v55  ;;  %v587_v63 = vmul.f32 %v863_v3, %v1077_v56  ;;  %v594_v5 = vmul.f32 %v863_v3, %v1084_v60  ;;  %v595_v6 = vmul.f32 %v863_v3, %v1087_v1 }
 0x2b7   :  { %v626_v7 = vmul.f32 %v1096_v22, %v586_v4  ;;  %v627_v0 = vmul.f32 %v1096_v22, %v587_v63  ;;  %v634_v8 = vmul.f32 %v1096_v22, %v594_v5  ;;  %v635_v12 = vmul.f32 %v1096_v22, %v595_v6 }
 0x2b9   :  { %v666_v15 = vadd.f32 %v658_v14, %v626_v7  ;;  %v667_v16 = vadd.f32 %v658_v14, %v627_v0  ;;  %v674_v55 = vadd.f32 %v658_v14, %v634_v8  ;;  %v675_v17 = vadd.f32 %v658_v14, %v635_v12 }
 0x2bb   :  { %682 = vst [vmem:[#allocation5 + $0x30] sm:$0xff] %v666_v15  ;;  %683 = vst [vmem:[#allocation5 + $0x38] sm:$0xff] %v667_v16 }
 0x2bc   :  { %690 = vst [vmem:[#allocation5 + $0x70] sm:$0xff] %v674_v55  ;;  %691 = vst [vmem:[#allocation5 + $0x78] sm:$0xff] %v675_v17 }
 0x2bd   :  { %897 = shalt.err (!%p894_p12)
}
 0x2be   :  { %s898_s18 = scalar_lea.hbm %s1138_s5, 2048 }
 0x2bf   :  { %p899_p13 = scmp.ne.s32.totalorder %s1138_s5, %s898_s18  ;;  %p902_p0 = scmp.lt.u32.totalorder %s898_s18, %s1138_s5 }
 0x2c1   :  { %p904_p1 = pnand %p902_p0, %p899_p13 }
 0x2c3   :  { %907 = shalt.err (!%p904_p1)
}
 0x2c4   :  { %703 = dma.vmem_to_hbm [thread:$0]  %s698_s14, 2048, %s1138_s5, [#allocation4], %s913_s28, %s913_s28, %s914_s29  }
 0x2c5   :  { %910 = dma.done.wait [#allocation4], 2048  }
 0x2c6   :  { %911 = vsyncadd [#allocation4], 4294965248 }
 0x2c7   :  { %707 = vsyncpa [#allocation3], 1 }
 0x2c8   :  { %708 = vsyncpa [#allocation4], 1 }

</bundles_post_ra>
